<compile_context>
chip_gen: v5e
topology: v5e:2x2
jax: 0.10.0
libtpu: 0.0.40
codegen_flags: <defaults>
</compile_context>

<pallas_src>
import jax
import jax.numpy as jnp
from jax.experimental import pallas as pl
from jax.experimental.pallas import tpu as pltpu


def _lnreg_kernel(params_ref, x_ref, o_ref):
    # params_ref: SMEM (3,) f32  -> [w0, w1, b]
    # x_ref:      VMEM (2, TB)   -> features on sublanes, batch on 128-lane axis
    # o_ref:      VMEM (1, TB)   -> lane-dense output
    w0 = params_ref[0]
    w1 = params_ref[1]
    b = params_ref[2]
    x0 = x_ref[0:1, :]                      # (1, TB)
    x1 = x_ref[1:2, :]                      # (1, TB)
    o_ref[...] = x0 * w0 + x1 * w1 + b      # pure VPU: 2 vmul + 2 vadd per tile


def lnreg_forward(x, weight, bias):
    """Pallas forward for lnreg: Linear(2, 1).

    x:      (B, 2)  float32
    weight: (1, 2)  float32   (PyTorch layout: (out_features, in_features))
    bias:   (1,)    float32
    returns (B, 1)  float32
    """
    x = jnp.asarray(x, jnp.float32)
    B, IN = x.shape
    OUT, IN_w = weight.shape
    assert IN == 2 and IN_w == 2 and OUT == 1

    # Batch goes on the 128-lane axis; pad it to a lane-aligned, tile-aligned extent.
    LANE = 128
    b_lane = pl.cdiv(B, LANE) * LANE
    tb = min(8192, b_lane)                   # per-grid-step tile, multiple of 128
    b_pad = pl.cdiv(b_lane, tb) * tb
    num_blocks = b_pad // tb

    # Feature-major, lane-dense input (2, B_pad); zero padding is sliced off below.
    x_t = jnp.zeros((IN, b_pad), jnp.float32).at[:, :B].set(x.T)

    # Parameters as three 32-bit scalars in SMEM (no VMEM tile / DMA per parameter).
    params = jnp.concatenate(
        [weight.reshape(-1), bias.reshape(-1)]).astype(jnp.float32)  # (3,)

    out = pl.pallas_call(
        _lnreg_kernel,
        out_shape=jax.ShapeDtypeStruct((1, b_pad), jnp.float32),
        grid=(num_blocks,),
        in_specs=[
            pl.BlockSpec(memory_space=pltpu.MemorySpace.SMEM),   # params, whole array
            pl.BlockSpec((IN, tb), lambda i: (0, i)),            # x tile, batch on lanes
        ],
        out_specs=pl.BlockSpec((1, tb), lambda i: (0, i)),       # lane-dense output tile
        compiler_params=pltpu.CompilerParams(
            dimension_semantics=("parallel",)),                  # shard batch across TCs
    )(params, x_t)

    return out[0, :B].reshape(B, OUT)


if __name__ == "__main__":
    key = jax.random.PRNGKey(0)
    k_w, k_b, k_x = jax.random.split(key, 3)

    # Deterministic parameter init mimicking torch.nn.Linear(2, 1):
    # uniform(-1/sqrt(in_features), 1/sqrt(in_features))
    bound = 1.0 / jnp.sqrt(2.0)
    weight = jax.random.uniform(k_w, (1, 2), jnp.float32, -bound, bound)
    bias = jax.random.uniform(k_b, (1,), jnp.float32, -bound, bound)

    # Inputs from the original module.
    hours_lala1 = jnp.array([[4.0, 7.0]], dtype=jnp.float32)
    x1 = jnp.array([[1.0, 3.0], [2.0, 5.0], [3.0, 6.0]], dtype=jnp.float32)
    # Larger batch to exercise the tiled / padded multi-block path.
    x_big = jax.random.normal(k_x, (10000, 2), jnp.float32)

    y_pred = lnreg_forward(hours_lala1, weight, bias)
    y_pred_batch = lnreg_forward(x1, weight, bias)
    y_pred_big = lnreg_forward(x_big, weight, bias)
    jax.block_until_ready((y_pred, y_pred_batch, y_pred_big))

    # Reference check in plain JAX
    ref = hours_lala1 @ weight.T + bias
    ref_batch = x1 @ weight.T + bias
    ref_big = x_big @ weight.T + bias
    assert jnp.allclose(y_pred, ref, atol=1e-5), (y_pred, ref)
    assert jnp.allclose(y_pred_batch, ref_batch, atol=1e-5), (y_pred_batch, ref_batch)
    assert jnp.allclose(y_pred_big, ref_big, atol=1e-5)

    print("KERNEL_OK")
</pallas_src>

<mosaic_0001>
module attributes {stable_mosaic.version = 11 : i64} {
  func.func @_lnreg_kernel(%arg0: i32, %arg1: memref<3xf32, #tpu.memory_space<smem>>, %arg2: memref<2x128xf32, #tpu.memory_space<vmem>>, %arg3: memref<1x128xf32, #tpu.memory_space<vmem>>) attributes {dimension_semantics = [#tpu.dimension_semantics<parallel>], iteration_bounds = array<i64: 1>, scalar_prefetch = 0 : i64, scratch_operands = 0 : i64, tpu.core_type = #tpu.core_type<tc>, window_params = [{transform_indices = @transform_0, window_bounds = array<i64: 3>}, {transform_indices = @transform_1, window_bounds = array<i64: 2, 128>}, {transform_indices = @transform_2, window_bounds = array<i64: 1, 128>}]} {
    %c0 = arith.constant 0 : index
    %0 = memref.load %arg1[%c0] : memref<3xf32, #tpu.memory_space<smem>>
    %c1 = arith.constant 1 : index
    %1 = memref.load %arg1[%c1] : memref<3xf32, #tpu.memory_space<smem>>
    %c2 = arith.constant 2 : index
    %2 = memref.load %arg1[%c2] : memref<3xf32, #tpu.memory_space<smem>>
    %c0_0 = arith.constant 0 : index
    %c0_1 = arith.constant 0 : index
    %3 = vector.load %arg2[%c0_0, %c0_1] : memref<2x128xf32, #tpu.memory_space<vmem>>, vector<1x128xf32>
    %c1_2 = arith.constant 1 : index
    %c0_3 = arith.constant 0 : index
    %4 = vector.load %arg2[%c1_2, %c0_3] : memref<2x128xf32, #tpu.memory_space<vmem>>, vector<1x128xf32>
    %5 = vector.broadcast %0 : f32 to vector<1x128xf32>
    %6 = arith.mulf %3, %5 : vector<1x128xf32>
    %7 = vector.broadcast %1 : f32 to vector<1x128xf32>
    %8 = arith.mulf %4, %7 : vector<1x128xf32>
    %9 = arith.addf %6, %8 : vector<1x128xf32>
    %10 = vector.broadcast %2 : f32 to vector<1x128xf32>
    %11 = arith.addf %9, %10 : vector<1x128xf32>
    %c0_4 = arith.constant 0 : index
    %c0_5 = arith.constant 0 : index
    %12 = vector.load %arg3[%c0_4, %c0_5] : memref<1x128xf32, #tpu.memory_space<vmem>>, vector<1x128xf32>
    tpu.vector_store %arg3[%c0_4, %c0_5], %11 {strides = array<i32>} : memref<1x128xf32, #tpu.memory_space<vmem>>, vector<1x128xf32>,
    return
  }
  func.func @transform_0(%arg0: i32) -> i32 {
    %c0_i32 = arith.constant 0 : i32
    %c0_i32_0 = arith.constant 0 : i32
    return %c0_i32 : i32
  }
  func.func @transform_1(%arg0: i32) -> (i32, i32) {
    %c0_i32 = arith.constant 0 : i32
    %c0_i32_0 = arith.constant 0 : i32
    return %c0_i32, %arg0 : i32, i32
  }
  func.func @transform_2(%arg0: i32) -> (i32, i32) {
    %c0_i32 = arith.constant 0 : i32
    %c0_i32_0 = arith.constant 0 : i32
    return %c0_i32, %arg0 : i32, i32
  }
}

</mosaic_0001>

<bundles_post_ra>
// kernel: tpu_custom_call.1
= control target key start
LH: loop header
LB: loop body
LE: loop exit
PB: predicated region body
PF: predicated region fallthrough
CT: control target
= control target key end

     0   :  { %7 = vsyncpa [#allocation5], 0  ;;  %s168_s0 = inlined_call_operand.hbm [shape: f32[3], index: 0, kind: input, shape index: {}]   ;;  %s169_s1 = inlined_call_operand.hbm [shape: f32[2,128], index: 1, kind: input, shape index: {}]   ;;  %s170_s2 = inlined_call_operand.hbm [shape: f32[1,128], index: 2, kind: output, shape index: {}]  }
   0x1   :  { %8 = vsyncpa [#allocation3], 0 }
   0x2   :  { %9 = vsyncpa [#allocation4], 0  ;;  %s15_s11 = sshll.u32 %s168_s0, 4  ;;  %s24_s14 = sshll.u32 %s169_s1, 4  ;;  %s16_s11 = int_to_ptr.hbm [resolvable:$true] %s15_s11  ;;  %s25_s14 = int_to_ptr.hbm [resolvable:$true] %s24_s14 }
   0x3   :  { %s141_s15 = smov [#allocation2]   ;;  %s142_s16 = smov [#allocation6]  }
   0x4   :  { %18 = dma.hbm_to_smem %s16_s11, 16, %s141_s15, [#allocation5]  }
   0x5   :  { %s26_s17 = sshll.u32 %s142_s16, 4  ;;  %s27_s17 = int_to_ptr.vmem [resolvable:$true] %s26_s17 }
   0x6   :  { %29 = dma.hbm_to_vmem [thread:$0]  %s25_s14, 32, %s27_s17, [#allocation3]  }
   0x7   :  { %135 = dma.done.wait [#allocation5], 16  }
   0x8   :  { %136 = vsyncadd [#allocation5], 4294967280 }
   0x9   :  { %137 = dma.done.wait [#allocation3], 32  }
   0xa   :  { %138 = vsyncadd [#allocation3], 4294967264 }
   0xb   :  { %38 = sfence }
   0xc   :  { %s39_s18 = sld [smem:[#allocation2]]  ;;  %v42_v0 = vld [vmem:[#allocation6] sm:$0x1]  ;;  %v43_v1 = vld [vmem:[#allocation6 + $0x1] sm:$0x1]  ;;  %s143_s1 = smov [#allocation7]  }
   0xd   :  { %s70_s19 = sld [smem:[#allocation2 + $0x1]]  ;;  %s57_s20 = sshll.u32 %s143_s1, 4  ;;  %s58_s20 = int_to_ptr.vmem [resolvable:$true] %s57_s20 }
   0xe   :  { %s71_s0 = sld [smem:[#allocation2 + $0x2]]  ;;  %s59_s23 = sshll.u32 %s170_s2, 4  ;;  %s60_s23 = int_to_ptr.hbm [resolvable:$true] %s59_s23 }
  0x12   :  { %v44_v2 = vstv %s39_s18 }
  0x13   :  { %v45_v3 = vmul.f32 %v44_v2, %v42_v0  ;;  %v46_v4 = vstv %s70_s19 }
  0x14   :  { %v47_v5 = vmul.f32 %v46_v4, %v43_v1  ;;  %v49_v6 = vstv %s71_s0 }
  0x16   :  { %v48_v7 = vadd.f32 %v47_v5, %v45_v3 }
  0x18   :  { %v50_v8 = vadd.f32 %v49_v6, %v48_v7 }
  0x1a   :  { %51 = vst [vmem:[#allocation7] sm:$0x1] %v50_v8 }
  0x1b   :  { %62 = dma.vmem_to_hbm [thread:$0]  %s58_s20, 16, %s60_s23, [#allocation4]  }
  0x1c   :  { %139 = dma.done.wait [#allocation4], 16  }
  0x1d   :  { %140 = vsyncadd [#allocation4], 4294967280 }
  0x1e   :  { %67 = vsyncpa [#allocation3], 1 }
  0x1f   :  { %68 = vsyncpa [#allocation4], 1 }
  0x20   :  { %69 = vsyncpa [#allocation5], 1 }

</bundles_post_ra>
